<compile_context>
chip_gen: v7x
topology: tpu7x:2x2x1
jax: 0.10.0
libtpu: 0.0.40
codegen_flags: <defaults>
</compile_context>

<pallas_src>
import functools

import jax
import jax.numpy as jnp
from jax.experimental import pallas as pl
from jax.experimental.pallas import tpu as pltpu

TOKEN_DICT_SIZE = 120
BN_EPS = 1e-5
LANE = 128
BF16_SUBLANE = 16   # bf16 LHS sublane tile


def _round_up(x, m):
    return ((x + m - 1) // m) * m


def _mlp_kernel(tokens_ref, embw1_ref, b1_ref, g1_ref, be1_ref,
                w2_ref, b2_ref, g2_ref, be2_ref,
                w3_ref, b3_ref,
                out_ref,
                *, batch_real, max_len):
    """Whole (padded) batch resident in VMEM; BN needs full-batch statistics."""
    b_pad = tokens_ref.shape[0]
    v_pad = embw1_ref.shape[1]

    vocab_iota = jax.lax.broadcasted_iota(jnp.int32, (b_pad, v_pad), 1)

    # ---- fused embedding + Linear(D1, 128): h1 = b1 + sum_t onehot_t @ (emb @ w1_t) ----
    acc = None
    for t in range(max_len):
        tok_t = tokens_ref[:, t:t + 1]                                 # (b_pad, 1) i32
        onehot = (tok_t == vocab_iota).astype(jnp.bfloat16)            # (b_pad, v_pad)
        d = jnp.dot(onehot, embw1_ref[t], preferred_element_type=jnp.float32)
        acc = d if acc is None else acc + d
    h = acc + b1_ref[...]                                              # (b_pad, 128) f32

    # Row mask: BN statistics must only cover the *real* batch rows.
    row_iota = jax.lax.broadcasted_iota(jnp.int32, (b_pad, 1), 0)
    mask = (row_iota < batch_real).astype(jnp.float32)                 # (b_pad, 1)
    inv_n = 1.0 / float(batch_real)

    def bn_relu(h, g_ref, be_ref):
        # Two-pass masked statistics (no E[h^2]-mean^2 cancellation); fold BN into
        # a per-feature scale/shift (one mul + one add per element).
        mean = jnp.sum(h * mask, axis=0, keepdims=True) * inv_n
        diff = (h - mean) * mask
        var = jnp.sum(diff * diff, axis=0, keepdims=True) * inv_n      # biased, as in PyTorch
        scale = g_ref[...] * jax.lax.rsqrt(var + BN_EPS)
        shift = be_ref[...] - mean * scale
        return jnp.maximum(h * scale + shift, 0.0)

    h = bn_relu(h, g1_ref, be1_ref)

    # ---- Linear(128, 64) + BN(64) + ReLU ----
    h = jnp.dot(h.astype(jnp.bfloat16), w2_ref[...],
                preferred_element_type=jnp.float32) + b2_ref[...]
    h = bn_relu(h, g2_ref, be2_ref)

    # ---- Linear(64, class_num padded to 128) -> lane-dense store ----
    out_ref[...] = (jnp.dot(h.astype(jnp.bfloat16), w3_ref[...],
                            preferred_element_type=jnp.float32)
                    + b3_ref[...]).astype(out_ref.dtype)


def prepare_params(params, max_len):
    """One-time parameter preparation (hoisted out of the per-call forward path)."""
    emb = params["embedding"].astype(jnp.float32)                      # (120, wd)
    word_dim = emb.shape[1]
    hid1 = params["w1"].shape[1]
    class_num = params["w3"].shape[1]
    v_pad = _round_up(emb.shape[0], LANE)
    cls_pad = _round_up(class_num, LANE)

    emb_p = jnp.zeros((v_pad, word_dim), jnp.float32).at[:emb.shape[0]].set(emb)
    # Fused table E[t] = emb_p @ w1[t*wd:(t+1)*wd, :], computed in f32, cast once to bf16.
    w1_r = params["w1"].astype(jnp.float32).reshape(max_len, word_dim, hid1)
    embw1 = jnp.einsum("vd,tdh->tvh", emb_p, w1_r).astype(jnp.bfloat16)  # (T, v_pad, 128)

    w3_p = jnp.zeros((params["w3"].shape[0], cls_pad), jnp.bfloat16).at[:, :class_num].set(
        params["w3"].astype(jnp.bfloat16))
    b3_p = jnp.zeros((1, cls_pad), jnp.float32).at[:, :class_num].set(
        params["b3"].astype(jnp.float32))

    return {
        "embw1": embw1,
        "b1": params["b1"].astype(jnp.float32),
        "g1": params["g1"].astype(jnp.float32),
        "be1": params["be1"].astype(jnp.float32),
        "w2": params["w2"].astype(jnp.bfloat16),
        "b2": params["b2"].astype(jnp.float32),
        "g2": params["g2"].astype(jnp.float32),
        "be2": params["be2"].astype(jnp.float32),
        "w3": w3_p,
        "b3": b3_p,
    }


def mlp_classifier_forward(tokens, lengths, prepared, class_num):
    """Forward pass of MLPClassifier.

    tokens:   (B, max_len) int32 token ids in [0, TOKEN_DICT_SIZE)
    lengths:  (B,) int32 -- unused by the PyTorch forward (kept for signature fidelity)
    prepared: output of prepare_params() (built once, reused across calls)
    """
    del lengths  # unused in the reference forward

    B, max_len = tokens.shape
    b_pad = _round_up(B, BF16_SUBLANE)       # bf16 LHS sublane tile; NOT padded to 128
    v_pad = prepared["embw1"].shape[1]
    hid1 = prepared["embw1"].shape[2]
    hid2 = prepared["w2"].shape[1]
    cls_pad = prepared["w3"].shape[1]

    # Only per-call prep: pad the token batch (padded rows are masked out of BN stats
    # and sliced off the output).
    tokens_p = jnp.zeros((b_pad, max_len), jnp.int32).at[:B].set(tokens.astype(jnp.int32))

    args = (
        tokens_p, prepared["embw1"],
        prepared["b1"], prepared["g1"], prepared["be1"],
        prepared["w2"], prepared["b2"], prepared["g2"], prepared["be2"],
        prepared["w3"], prepared["b3"],
    )

    flops = 2 * b_pad * (max_len * v_pad * hid1 + hid1 * hid2 + hid2 * cls_pad)
    bytes_accessed = (
        tokens_p.size * 4 + prepared["embw1"].size * 2
        + prepared["w2"].size * 2 + prepared["w3"].size * 2
        + sum(prepared[k].size for k in ("b1", "g1", "be1", "b2", "g2", "be2", "b3")) * 4
        + b_pad * cls_pad * 4
    )

    kernel = functools.partial(_mlp_kernel, batch_real=B, max_len=max_len)

    out = pl.pallas_call(
        kernel,
        out_shape=jax.ShapeDtypeStruct((b_pad, cls_pad), jnp.float32),
        in_specs=[pl.BlockSpec(memory_space=pltpu.MemorySpace.VMEM) for _ in args],
        out_specs=pl.BlockSpec(memory_space=pltpu.MemorySpace.VMEM),
        cost_estimate=pl.CostEstimate(flops=flops, transcendentals=hid1 + hid2,
                                      bytes_accessed=bytes_accessed),
    )(*args)

    # Strip batch / class padding (padded logits must never reach softmax/argmax).
    return out[:B, :class_num]


def init_params(key, max_len, word_dim, class_num):
    d1 = max_len * word_dim
    ks = jax.random.split(key, 8)
    scale = 0.05
    return {
        "embedding": jax.random.normal(ks[0], (TOKEN_DICT_SIZE, word_dim), jnp.float32),
        # Linear weights stored as (in, out); row vectors (1, out) for biases / BN params.
        "w1": scale * jax.random.normal(ks[1], (d1, 128), jnp.float32),
        "b1": scale * jax.random.normal(ks[2], (1, 128), jnp.float32),
        "g1": jnp.ones((1, 128), jnp.float32),
        "be1": jnp.zeros((1, 128), jnp.float32),
        "w2": scale * jax.random.normal(ks[3], (128, 64), jnp.float32),
        "b2": scale * jax.random.normal(ks[4], (1, 64), jnp.float32),
        "g2": jnp.ones((1, 64), jnp.float32),
        "be2": jnp.zeros((1, 64), jnp.float32),
        "w3": scale * jax.random.normal(ks[5], (64, class_num), jnp.float32),
        "b3": scale * jax.random.normal(ks[6], (1, class_num), jnp.float32),
    }


def _reference_forward(tokens, params):
    """Pure-JAX f32 emulation of the PyTorch module (training-mode BN)."""
    x = params["embedding"][tokens]                     # (B, T, wd)
    x = x.reshape(x.shape[0], -1)

    def bn(h, g, be):
        mean = jnp.mean(h, axis=0, keepdims=True)
        var = jnp.mean((h - mean) ** 2, axis=0, keepdims=True)   # biased
        return (h - mean) * jax.lax.rsqrt(var + BN_EPS) * g + be

    h = x @ params["w1"] + params["b1"]
    h = jnp.maximum(bn(h, params["g1"], params["be1"]), 0.0)
    h = h @ params["w2"] + params["b2"]
    h = jnp.maximum(bn(h, params["g2"], params["be2"]), 0.0)
    return h @ params["w3"] + params["b3"]


if __name__ == "__main__":
    # Small shapes consistent with the module.
    B, MAX_LEN, WORD_DIM, CLASS_NUM = 8, 8, 16, 10

    key = jax.random.PRNGKey(0)
    k_tok, k_len, k_par = jax.random.split(key, 3)

    tokens = jax.random.randint(k_tok, (B, MAX_LEN), 0, TOKEN_DICT_SIZE, dtype=jnp.int32)
    lengths = jax.random.randint(k_len, (B,), 1, MAX_LEN + 1, dtype=jnp.int32)
    params = init_params(k_par, MAX_LEN, WORD_DIM, CLASS_NUM)

    prepared = prepare_params(params, MAX_LEN)   # one-time parameter prep (hoisted)

    out = mlp_classifier_forward(tokens, lengths, prepared, CLASS_NUM)
    jax.block_until_ready(out)

    assert out.shape == (B, CLASS_NUM) and out.dtype == jnp.float32
    assert bool(jnp.all(jnp.isfinite(out)))

    # bf16-matmul kernel vs f32 reference: expect ~1e-2-level differences in logits.
    ref = _reference_forward(tokens, params)
    max_err = float(jnp.max(jnp.abs(out - ref)))
    assert max_err < 5e-2, f"max |err| vs f32 reference = {max_err}"

    print("KERNEL_OK")
</pallas_src>

<mosaic_0001>
module attributes {stable_mosaic.version = 11 : i64} {
  func.func @_mlp_kernel(%arg0: memref<16x8xi32, #tpu.memory_space<vmem>>, %arg1: memref<8x128x128xbf16, #tpu.memory_space<vmem>>, %arg2: memref<1x128xf32, #tpu.memory_space<vmem>>, %arg3: memref<1x128xf32, #tpu.memory_space<vmem>>, %arg4: memref<1x128xf32, #tpu.memory_space<vmem>>, %arg5: memref<128x64xbf16, #tpu.memory_space<vmem>>, %arg6: memref<1x64xf32, #tpu.memory_space<vmem>>, %arg7: memref<1x64xf32, #tpu.memory_space<vmem>>, %arg8: memref<1x64xf32, #tpu.memory_space<vmem>>, %arg9: memref<64x128xbf16, #tpu.memory_space<vmem>>, %arg10: memref<1x128xf32, #tpu.memory_space<vmem>>, %arg11: memref<16x128xf32, #tpu.memory_space<vmem>>) attributes {dimension_semantics = [], scalar_prefetch = 0 : i64, scratch_operands = 0 : i64, tpu.core_type = #tpu.core_type<tc>} {
    %0 = tpu.iota {dimensions = array<i32: 1>} : vector<16x128xi32>
    %c0 = arith.constant 0 : index
    %c0_0 = arith.constant 0 : index
    %1 = vector.load %arg0[%c0, %c0_0] : memref<16x8xi32, #tpu.memory_space<vmem>>, vector<16x1xi32>
    %2 = vector.broadcast %1 : vector<16x1xi32> to vector<16x128xi32>
    %3 = arith.cmpi eq, %2, %0 : vector<16x128xi32>
    %4 = arith.extui %3 : vector<16x128xi1> to vector<16x128xi32>
    %5 = arith.sitofp %4 : vector<16x128xi32> to vector<16x128xf32>
    %6 = arith.truncf %5 : vector<16x128xf32> to vector<16x128xbf16>
    %c0_1 = arith.constant 0 : index
    %c0_2 = arith.constant 0 : index
    %c0_3 = arith.constant 0 : index
    %7 = vector.load %arg1[%c0_1, %c0_2, %c0_3] : memref<8x128x128xbf16, #tpu.memory_space<vmem>>, vector<1x128x128xbf16>
    %8 = vector.shape_cast %7 : vector<1x128x128xbf16> to vector<128x128xbf16>
    %cst = arith.constant dense<0.000000e+00> : vector<16x128xf32>
    %9 = tpu.matmul %6, %8, %cst {dimension_numbers = #tpu.dot_dimension_numbers<[1], [0], [0], [1], [0, 0, 1, 1], [], []>} : vector<16x128xbf16>, vector<128x128xbf16>, vector<16x128xf32> -> vector<16x128xf32>
    %c0_4 = arith.constant 0 : index
    %c1 = arith.constant 1 : index
    %10 = vector.load %arg0[%c0_4, %c1] : memref<16x8xi32, #tpu.memory_space<vmem>>, vector<16x1xi32>
    %11 = vector.broadcast %10 : vector<16x1xi32> to vector<16x128xi32>
    %12 = arith.cmpi eq, %11, %0 : vector<16x128xi32>
    %13 = arith.extui %12 : vector<16x128xi1> to vector<16x128xi32>
    %14 = arith.sitofp %13 : vector<16x128xi32> to vector<16x128xf32>
    %15 = arith.truncf %14 : vector<16x128xf32> to vector<16x128xbf16>
    %c1_5 = arith.constant 1 : index
    %c0_6 = arith.constant 0 : index
    %c0_7 = arith.constant 0 : index
    %16 = vector.load %arg1[%c1_5, %c0_6, %c0_7] : memref<8x128x128xbf16, #tpu.memory_space<vmem>>, vector<1x128x128xbf16>
    %17 = vector.shape_cast %16 : vector<1x128x128xbf16> to vector<128x128xbf16>
    %cst_8 = arith.constant dense<0.000000e+00> : vector<16x128xf32>
    %18 = tpu.matmul %15, %17, %cst_8 {dimension_numbers = #tpu.dot_dimension_numbers<[1], [0], [0], [1], [0, 0, 1, 1], [], []>} : vector<16x128xbf16>, vector<128x128xbf16>, vector<16x128xf32> -> vector<16x128xf32>
    %19 = arith.addf %9, %18 : vector<16x128xf32>
    %c0_9 = arith.constant 0 : index
    %c2 = arith.constant 2 : index
    %20 = vector.load %arg0[%c0_9, %c2] : memref<16x8xi32, #tpu.memory_space<vmem>>, vector<16x1xi32>
    %21 = vector.broadcast %20 : vector<16x1xi32> to vector<16x128xi32>
    %22 = arith.cmpi eq, %21, %0 : vector<16x128xi32>
    %23 = arith.extui %22 : vector<16x128xi1> to vector<16x128xi32>
    %24 = arith.sitofp %23 : vector<16x128xi32> to vector<16x128xf32>
    %25 = arith.truncf %24 : vector<16x128xf32> to vector<16x128xbf16>
    %c2_10 = arith.constant 2 : index
    %c0_11 = arith.constant 0 : index
    %c0_12 = arith.constant 0 : index
    %26 = vector.load %arg1[%c2_10, %c0_11, %c0_12] : memref<8x128x128xbf16, #tpu.memory_space<vmem>>, vector<1x128x128xbf16>
    %27 = vector.shape_cast %26 : vector<1x128x128xbf16> to vector<128x128xbf16>
    %cst_13 = arith.constant dense<0.000000e+00> : vector<16x128xf32>
    %28 = tpu.matmul %25, %27, %cst_13 {dimension_numbers = #tpu.dot_dimension_numbers<[1], [0], [0], [1], [0, 0, 1, 1], [], []>} : vector<16x128xbf16>, vector<128x128xbf16>, vector<16x128xf32> -> vector<16x128xf32>
    %29 = arith.addf %19, %28 : vector<16x128xf32>
    %c0_14 = arith.constant 0 : index
    %c3 = arith.constant 3 : index
    %30 = vector.load %arg0[%c0_14, %c3] : memref<16x8xi32, #tpu.memory_space<vmem>>, vector<16x1xi32>
    %31 = vector.broadcast %30 : vector<16x1xi32> to vector<16x128xi32>
    %32 = arith.cmpi eq, %31, %0 : vector<16x128xi32>
    %33 = arith.extui %32 : vector<16x128xi1> to vector<16x128xi32>
    %34 = arith.sitofp %33 : vector<16x128xi32> to vector<16x128xf32>
    %35 = arith.truncf %34 : vector<16x128xf32> to vector<16x128xbf16>
    %c3_15 = arith.constant 3 : index
    %c0_16 = arith.constant 0 : index
    %c0_17 = arith.constant 0 : index
    %36 = vector.load %arg1[%c3_15, %c0_16, %c0_17] : memref<8x128x128xbf16, #tpu.memory_space<vmem>>, vector<1x128x128xbf16>
    %37 = vector.shape_cast %36 : vector<1x128x128xbf16> to vector<128x128xbf16>
    %cst_18 = arith.constant dense<0.000000e+00> : vector<16x128xf32>
    %38 = tpu.matmul %35, %37, %cst_18 {dimension_numbers = #tpu.dot_dimension_numbers<[1], [0], [0], [1], [0, 0, 1, 1], [], []>} : vector<16x128xbf16>, vector<128x128xbf16>, vector<16x128xf32> -> vector<16x128xf32>
    %39 = arith.addf %29, %38 : vector<16x128xf32>
    %c0_19 = arith.constant 0 : index
    %c4 = arith.constant 4 : index
    %40 = vector.load %arg0[%c0_19, %c4] : memref<16x8xi32, #tpu.memory_space<vmem>>, vector<16x1xi32>
    %41 = vector.broadcast %40 : vector<16x1xi32> to vector<16x128xi32>
    %42 = arith.cmpi eq, %41, %0 : vector<16x128xi32>
    %43 = arith.extui %42 : vector<16x128xi1> to vector<16x128xi32>
    %44 = arith.sitofp %43 : vector<16x128xi32> to vector<16x128xf32>
    %45 = arith.truncf %44 : vector<16x128xf32> to vector<16x128xbf16>
    %c4_20 = arith.constant 4 : index
    %c0_21 = arith.constant 0 : index
    %c0_22 = arith.constant 0 : index
    %46 = vector.load %arg1[%c4_20, %c0_21, %c0_22] : memref<8x128x128xbf16, #tpu.memory_space<vmem>>, vector<1x128x128xbf16>
    %47 = vector.shape_cast %46 : vector<1x128x128xbf16> to vector<128x128xbf16>
    %cst_23 = arith.constant dense<0.000000e+00> : vector<16x128xf32>
    %48 = tpu.matmul %45, %47, %cst_23 {dimension_numbers = #tpu.dot_dimension_numbers<[1], [0], [0], [1], [0, 0, 1, 1], [], []>} : vector<16x128xbf16>, vector<128x128xbf16>, vector<16x128xf32> -> vector<16x128xf32>
    %49 = arith.addf %39, %48 : vector<16x128xf32>
    %c0_24 = arith.constant 0 : index
    %c5 = arith.constant 5 : index
    %50 = vector.load %arg0[%c0_24, %c5] : memref<16x8xi32, #tpu.memory_space<vmem>>, vector<16x1xi32>
    %51 = vector.broadcast %50 : vector<16x1xi32> to vector<16x128xi32>
    %52 = arith.cmpi eq, %51, %0 : vector<16x128xi32>
    %53 = arith.extui %52 : vector<16x128xi1> to vector<16x128xi32>
    %54 = arith.sitofp %53 : vector<16x128xi32> to vector<16x128xf32>
    %55 = arith.truncf %54 : vector<16x128xf32> to vector<16x128xbf16>
    %c5_25 = arith.constant 5 : index
    %c0_26 = arith.constant 0 : index
    %c0_27 = arith.constant 0 : index
    %56 = vector.load %arg1[%c5_25, %c0_26, %c0_27] : memref<8x128x128xbf16, #tpu.memory_space<vmem>>, vector<1x128x128xbf16>
    %57 = vector.shape_cast %56 : vector<1x128x128xbf16> to vector<128x128xbf16>
    %cst_28 = arith.constant dense<0.000000e+00> : vector<16x128xf32>
    %58 = tpu.matmul %55, %57, %cst_28 {dimension_numbers = #tpu.dot_dimension_numbers<[1], [0], [0], [1], [0, 0, 1, 1], [], []>} : vector<16x128xbf16>, vector<128x128xbf16>, vector<16x128xf32> -> vector<16x128xf32>
    %59 = arith.addf %49, %58 : vector<16x128xf32>
    %c0_29 = arith.constant 0 : index
    %c6 = arith.constant 6 : index
    %60 = vector.load %arg0[%c0_29, %c6] : memref<16x8xi32, #tpu.memory_space<vmem>>, vector<16x1xi32>
    %61 = vector.broadcast %60 : vector<16x1xi32> to vector<16x128xi32>
    %62 = arith.cmpi eq, %61, %0 : vector<16x128xi32>
    %63 = arith.extui %62 : vector<16x128xi1> to vector<16x128xi32>
    %64 = arith.sitofp %63 : vector<16x128xi32> to vector<16x128xf32>
    %65 = arith.truncf %64 : vector<16x128xf32> to vector<16x128xbf16>
    %c6_30 = arith.constant 6 : index
    %c0_31 = arith.constant 0 : index
    %c0_32 = arith.constant 0 : index
    %66 = vector.load %arg1[%c6_30, %c0_31, %c0_32] : memref<8x128x128xbf16, #tpu.memory_space<vmem>>, vector<1x128x128xbf16>
    %67 = vector.shape_cast %66 : vector<1x128x128xbf16> to vector<128x128xbf16>
    %cst_33 = arith.constant dense<0.000000e+00> : vector<16x128xf32>
    %68 = tpu.matmul %65, %67, %cst_33 {dimension_numbers = #tpu.dot_dimension_numbers<[1], [0], [0], [1], [0, 0, 1, 1], [], []>} : vector<16x128xbf16>, vector<128x128xbf16>, vector<16x128xf32> -> vector<16x128xf32>
    %69 = arith.addf %59, %68 : vector<16x128xf32>
    %c0_34 = arith.constant 0 : index
    %c7 = arith.constant 7 : index
    %70 = vector.load %arg0[%c0_34, %c7] : memref<16x8xi32, #tpu.memory_space<vmem>>, vector<16x1xi32>
    %71 = vector.broadcast %70 : vector<16x1xi32> to vector<16x128xi32>
    %72 = arith.cmpi eq, %71, %0 : vector<16x128xi32>
    %73 = arith.extui %72 : vector<16x128xi1> to vector<16x128xi32>
    %74 = arith.sitofp %73 : vector<16x128xi32> to vector<16x128xf32>
    %75 = arith.truncf %74 : vector<16x128xf32> to vector<16x128xbf16>
    %c7_35 = arith.constant 7 : index
    %c0_36 = arith.constant 0 : index
    %c0_37 = arith.constant 0 : index
    %76 = vector.load %arg1[%c7_35, %c0_36, %c0_37] : memref<8x128x128xbf16, #tpu.memory_space<vmem>>, vector<1x128x128xbf16>
    %77 = vector.shape_cast %76 : vector<1x128x128xbf16> to vector<128x128xbf16>
    %cst_38 = arith.constant dense<0.000000e+00> : vector<16x128xf32>
    %78 = tpu.matmul %75, %77, %cst_38 {dimension_numbers = #tpu.dot_dimension_numbers<[1], [0], [0], [1], [0, 0, 1, 1], [], []>} : vector<16x128xbf16>, vector<128x128xbf16>, vector<16x128xf32> -> vector<16x128xf32>
    %79 = arith.addf %69, %78 : vector<16x128xf32>
    %c0_39 = arith.constant 0 : index
    %c0_40 = arith.constant 0 : index
    %80 = vector.load %arg2[%c0_39, %c0_40] : memref<1x128xf32, #tpu.memory_space<vmem>>, vector<1x128xf32>
    %81 = vector.broadcast %80 : vector<1x128xf32> to vector<16x128xf32>
    %82 = arith.addf %79, %81 : vector<16x128xf32>
    %83 = tpu.iota {dimensions = array<i32: 0>} : vector<16x1xi32>
    %c8_i32 = arith.constant 8 : i32
    %84 = vector.broadcast %c8_i32 : i32 to vector<16x1xi32>
    %85 = arith.cmpi slt, %83, %84 : vector<16x1xi32>
    %86 = arith.extui %85 : vector<16x1xi1> to vector<16x1xi32>
    %87 = arith.sitofp %86 : vector<16x1xi32> to vector<16x1xf32>
    %88 = vector.broadcast %87 : vector<16x1xf32> to vector<16x128xf32>
    %89 = arith.mulf %82, %88 : vector<16x128xf32>
    %cst_41 = arith.constant dense<0.000000e+00> : vector<128xf32>
    %90 = vector.multi_reduction <add>, %89, %cst_41 [0] : vector<16x128xf32> to vector<128xf32>
    %91 = vector.shape_cast %90 : vector<128xf32> to vector<1x128xf32>
    %cst_42 = arith.constant 1.250000e-01 : f32
    %92 = vector.broadcast %cst_42 : f32 to vector<1x128xf32>
    %93 = arith.mulf %91, %92 : vector<1x128xf32>
    %94 = vector.broadcast %93 : vector<1x128xf32> to vector<16x128xf32>
    %95 = arith.subf %82, %94 : vector<16x128xf32>
    %96 = vector.broadcast %87 : vector<16x1xf32> to vector<16x128xf32>
    %97 = arith.mulf %95, %96 : vector<16x128xf32>
    %98 = arith.mulf %97, %97 : vector<16x128xf32>
    %cst_43 = arith.constant dense<0.000000e+00> : vector<128xf32>
    %99 = vector.multi_reduction <add>, %98, %cst_43 [0] : vector<16x128xf32> to vector<128xf32>
    %100 = vector.shape_cast %99 : vector<128xf32> to vector<1x128xf32>
    %cst_44 = arith.constant 1.250000e-01 : f32
    %101 = vector.broadcast %cst_44 : f32 to vector<1x128xf32>
    %102 = arith.mulf %100, %101 : vector<1x128xf32>
    %c0_45 = arith.constant 0 : index
    %c0_46 = arith.constant 0 : index
    %103 = vector.load %arg3[%c0_45, %c0_46] : memref<1x128xf32, #tpu.memory_space<vmem>>, vector<1x128xf32>
    %cst_47 = arith.constant 9.99999974E-6 : f32
    %104 = vector.broadcast %cst_47 : f32 to vector<1x128xf32>
    %105 = arith.addf %102, %104 : vector<1x128xf32>
    %106 = math.rsqrt %105 : vector<1x128xf32>
    %107 = arith.mulf %103, %106 : vector<1x128xf32>
    %c0_48 = arith.constant 0 : index
    %c0_49 = arith.constant 0 : index
    %108 = vector.load %arg4[%c0_48, %c0_49] : memref<1x128xf32, #tpu.memory_space<vmem>>, vector<1x128xf32>
    %109 = arith.mulf %93, %107 : vector<1x128xf32>
    %110 = arith.subf %108, %109 : vector<1x128xf32>
    %111 = vector.broadcast %107 : vector<1x128xf32> to vector<16x128xf32>
    %112 = arith.mulf %82, %111 : vector<16x128xf32>
    %113 = vector.broadcast %110 : vector<1x128xf32> to vector<16x128xf32>
    %114 = arith.addf %112, %113 : vector<16x128xf32>
    %cst_50 = arith.constant 0.000000e+00 : f32
    %115 = vector.broadcast %cst_50 : f32 to vector<16x128xf32>
    %116 = arith.maximumf %114, %115 : vector<16x128xf32>
    %117 = arith.truncf %116 : vector<16x128xf32> to vector<16x128xbf16>
    %c0_51 = arith.constant 0 : index
    %c0_52 = arith.constant 0 : index
    %118 = vector.load %arg5[%c0_51, %c0_52] : memref<128x64xbf16, #tpu.memory_space<vmem>>, vector<128x64xbf16>
    %cst_53 = arith.constant dense<0.000000e+00> : vector<16x64xf32>
    %119 = tpu.matmul %117, %118, %cst_53 {dimension_numbers = #tpu.dot_dimension_numbers<[1], [0], [0], [1], [0, 0, 1, 1], [], []>} : vector<16x128xbf16>, vector<128x64xbf16>, vector<16x64xf32> -> vector<16x64xf32>
    %c0_54 = arith.constant 0 : index
    %c0_55 = arith.constant 0 : index
    %120 = vector.load %arg6[%c0_54, %c0_55] : memref<1x64xf32, #tpu.memory_space<vmem>>, vector<1x64xf32>
    %121 = vector.broadcast %120 : vector<1x64xf32> to vector<16x64xf32>
    %122 = arith.addf %119, %121 : vector<16x64xf32>
    %123 = vector.broadcast %87 : vector<16x1xf32> to vector<16x64xf32>
    %124 = arith.mulf %122, %123 : vector<16x64xf32>
    %cst_56 = arith.constant dense<0.000000e+00> : vector<64xf32>
    %125 = vector.multi_reduction <add>, %124, %cst_56 [0] : vector<16x64xf32> to vector<64xf32>
    %126 = vector.shape_cast %125 : vector<64xf32> to vector<1x64xf32>
    %cst_57 = arith.constant 1.250000e-01 : f32
    %127 = vector.broadcast %cst_57 : f32 to vector<1x64xf32>
    %128 = arith.mulf %126, %127 : vector<1x64xf32>
    %129 = vector.broadcast %128 : vector<1x64xf32> to vector<16x64xf32>
    %130 = arith.subf %122, %129 : vector<16x64xf32>
    %131 = vector.broadcast %87 : vector<16x1xf32> to vector<16x64xf32>
    %132 = arith.mulf %130, %131 : vector<16x64xf32>
    %133 = arith.mulf %132, %132 : vector<16x64xf32>
    %cst_58 = arith.constant dense<0.000000e+00> : vector<64xf32>
    %134 = vector.multi_reduction <add>, %133, %cst_58 [0] : vector<16x64xf32> to vector<64xf32>
    %135 = vector.shape_cast %134 : vector<64xf32> to vector<1x64xf32>
    %cst_59 = arith.constant 1.250000e-01 : f32
    %136 = vector.broadcast %cst_59 : f32 to vector<1x64xf32>
    %137 = arith.mulf %135, %136 : vector<1x64xf32>
    %c0_60 = arith.constant 0 : index
    %c0_61 = arith.constant 0 : index
    %138 = vector.load %arg7[%c0_60, %c0_61] : memref<1x64xf32, #tpu.memory_space<vmem>>, vector<1x64xf32>
    %cst_62 = arith.constant 9.99999974E-6 : f32
    %139 = vector.broadcast %cst_62 : f32 to vector<1x64xf32>
    %140 = arith.addf %137, %139 : vector<1x64xf32>
    %141 = math.rsqrt %140 : vector<1x64xf32>
    %142 = arith.mulf %138, %141 : vector<1x64xf32>
    %c0_63 = arith.constant 0 : index
    %c0_64 = arith.constant 0 : index
    %143 = vector.load %arg8[%c0_63, %c0_64] : memref<1x64xf32, #tpu.memory_space<vmem>>, vector<1x64xf32>
    %144 = arith.mulf %128, %142 : vector<1x64xf32>
    %145 = arith.subf %143, %144 : vector<1x64xf32>
    %146 = vector.broadcast %142 : vector<1x64xf32> to vector<16x64xf32>
    %147 = arith.mulf %122, %146 : vector<16x64xf32>
    %148 = vector.broadcast %145 : vector<1x64xf32> to vector<16x64xf32>
    %149 = arith.addf %147, %148 : vector<16x64xf32>
    %cst_65 = arith.constant 0.000000e+00 : f32
    %150 = vector.broadcast %cst_65 : f32 to vector<16x64xf32>
    %151 = arith.maximumf %149, %150 : vector<16x64xf32>
    %152 = arith.truncf %151 : vector<16x64xf32> to vector<16x64xbf16>
    %c0_66 = arith.constant 0 : index
    %c0_67 = arith.constant 0 : index
    %153 = vector.load %arg9[%c0_66, %c0_67] : memref<64x128xbf16, #tpu.memory_space<vmem>>, vector<64x128xbf16>
    %cst_68 = arith.constant dense<0.000000e+00> : vector<16x128xf32>
    %154 = tpu.matmul %152, %153, %cst_68 {dimension_numbers = #tpu.dot_dimension_numbers<[1], [0], [0], [1], [0, 0, 1, 1], [], []>} : vector<16x64xbf16>, vector<64x128xbf16>, vector<16x128xf32> -> vector<16x128xf32>
    %c0_69 = arith.constant 0 : index
    %c0_70 = arith.constant 0 : index
    %155 = vector.load %arg10[%c0_69, %c0_70] : memref<1x128xf32, #tpu.memory_space<vmem>>, vector<1x128xf32>
    %156 = vector.broadcast %155 : vector<1x128xf32> to vector<16x128xf32>
    %157 = arith.addf %154, %156 : vector<16x128xf32>
    %c0_71 = arith.constant 0 : index
    %c0_72 = arith.constant 0 : index
    %158 = vector.load %arg11[%c0_71, %c0_72] : memref<16x128xf32, #tpu.memory_space<vmem>>, vector<16x128xf32>
    tpu.vector_store %arg11[%c0_71, %c0_72], %157 {strides = array<i32>} : memref<16x128xf32, #tpu.memory_space<vmem>>, vector<16x128xf32>,
    return
  }
}

</mosaic_0001>

<bundles_post_ra>
// kernel: tpu_custom_call.1
= control target key start
LH: loop header
LB: loop body
LE: loop exit
PB: predicated region body
PF: predicated region fallthrough
CT: control target
= control target key end

     0   :  { %16 = vsyncpa [#allocation3], 0  ;;  %s2225_s0 = inlined_call_operand.vmem [shape: s32[16,8], index: 0, kind: input, shape index: {}]   ;;  %s2226_s1 = inlined_call_operand.hbm [shape: bf16[8,128,128], index: 1, kind: input, shape index: {}]   ;;  %s2227_s2 = inlined_call_operand.vmem [shape: f32[1,128], index: 2, kind: input, shape index: {}]   ;;  %s2228_s3 = inlined_call_operand.vmem [shape: f32[1,128], index: 3, kind: input, shape index: {}]   ;;  %s2229_s4 = inlined_call_operand.vmem [shape: f32[1,128], index: 4, kind: input, shape index: {}]   ;;  %s2230_s5 = inlined_call_operand.vmem [shape: bf16[128,64], index: 5, kind: input, shape index: {}]   ;;  %s2231_s6 = inlined_call_operand.vmem [shape: f32[1,64], index: 6, kind: input, shape index: {}]   ;;  %s2232_s7 = inlined_call_operand.vmem [shape: f32[1,64], index: 7, kind: input, shape index: {}]   ;;  %s2233_s8 = inlined_call_operand.vmem [shape: f32[1,64], index: 8, kind: input, shape index: {}]   ;;  %s2234_s9 = inlined_call_operand.vmem [shape: bf16[64,128], index: 9, kind: input, shape index: {}]   ;;  %s2235_s10 = inlined_call_operand.vmem [shape: f32[1,128], index: 10, kind: input, shape index: {}]   ;;  %s2236_s11 = inlined_call_operand.hbm [shape: f32[16,128], index: 11, kind: output, shape index: {}]  }
   0x1   :  { %17 = vsyncpa [#allocation4], 0  ;;  %s1906_s17 = smov [#allocation2]   ;;  %s1858_s21 = scalar_lea.hbm %s2226_s1, 8192 }
   0x2   :  { %s25_s18 = sshll.u32 %s1906_s17, 4  ;;  %p1859_p0 = scmp.ne.s32.totalorder %s2226_s1, %s1858_s21  ;;  %s26_s18 = int_to_ptr.vmem [resolvable:$true] %s25_s18 }
   0x3   :  { %p1862_p1 = scmp.lt.u32.totalorder %s1858_s21, %s2226_s1 }
   0x5   :  { %p1864_p2 = pnand %p1862_p1, %p1859_p0 }
   0x7   :  { %1867 = shalt.err (!%p1864_p2)
}
   0x8   :  { %s1868_s26 = scalar_lea.vmem %s26_s18, 8192  ;;  %p1873_p4 = scmp.lt.s32.totalorder %s26_s18, %s26_s18 }
   0x9   :  { %p1869_p3 = scmp.ne.s32.totalorder %s26_s18, %s1868_s26  ;;  %p1874_p5 = scmp.lt.s32.totalorder %s1868_s26, %s1868_s26 }
   0xb   :  { %p1875_p6 = por %p1874_p5, %p1873_p4 }
   0xd   :  { %p1876_p7 = pnand %p1875_p6, %p1869_p3 }
   0xf   :  { %1879 = shalt.err (!%p1876_p7)
}
  0x10   :  { %s1907_s27 = smov 64   ;;  %s1908_s28 = smov 4  }
  0x11   :  { %31 = dma.hbm_to_vmem [thread:$0]  %s2226_s1, 8192, %s26_s18, [#allocation3], %s1907_s27, %s1907_s27, %s1908_s28  }
  0x12   :  { %1902 = dma.done.wait [#allocation3], 8192  }
  0x13   :  { %1903 = vsyncadd [#allocation3], 4294959104  ;;  %v1909_v0 = vmov 1   ;;  %v1910_v1 = vmov 0   ;;  %v1911_v2 = vmov 0.0   ;;  %v2000_v3 = vld [vmem:[%s2225_s0] sm:$0xff]  ;;  %v54_v27 = vlaneseq }
  0x14   :  { %1765 = vset.pattern.permute.xlu0 %v1909_v0  ;;  %1766 = vset.pattern.permute.xlu1 %v1910_v1  ;;  %v2005_v4 = vld [vmem:[%s2225_s0 + $0x8] sm:$0xff]  ;;  %v1778_v5 = vld [vmem:[#allocation2 + $0x40] sm:$0xff]   ;;  %v1782_v9 = vld [vmem:[#allocation2 + $0x50] sm:$0xff]   ;;  %vm1912_vm0 = vmmov 0   ;;  %v1913_v11 = vmov 2   ;;  %v1914_v14 = vmov 3  }
  0x15   :  { %1556 = vmatprep.subr.bf16.mxu0 %v1911_v2  ;;  %1576 = vmatprep.subr.bf16.mxu1 %v1911_v2  ;;  %v1779_v6 = vld [vmem:[#allocation2] sm:$0xff]   ;;  %v1780_v7 = vld [vmem:[#allocation2 + $0x48] sm:$0xff]   ;;  %v1783_v10 = vld [vmem:[#allocation2 + $0x10] sm:$0xff]   ;;  %v1915_v17 = vmov 4   ;;  %v1916_v18 = vmov 5   ;;  %v1917_v21 = vmov 6  }
  0x16   :  { %59 = vperm.xlu1 %1766, %v2000_v3   ;;  %88 = vperm.xlu0 %1765, %v2000_v3   ;;  %v1781_v8 = vld [vmem:[#allocation2 + $0x8] sm:$0xff]   ;;  %v1784_v12 = vld [vmem:[#allocation2 + $0x58] sm:$0xff]   ;;  %v1786_v15 = vld [vmem:[#allocation2 + $0x60] sm:$0xff]   ;;  %v1918_v26 = vmov 7   ;;  %v2044_v30 = vand.u32 127, %v54_v27 }
  0x17   :  { %1557 = vmatpush3.bf16.msra.mxu0 %v1778_v5  ;;  %1577 = vmatpush3.bf16.msra.mxu1 %v1779_v6  ;;  %v1785_v13 = vld [vmem:[#allocation2 + $0x18] sm:$0xff]   ;;  %v1787_v16 = vld [vmem:[#allocation2 + $0x20] sm:$0xff]   ;;  %v1788_v19 = vld [vmem:[#allocation2 + $0x68] sm:$0xff]   ;;  %v1919_v35 = vmov 1.0|1.0  }
  0x18   :  { %1558 = vmatprep.subr.bf16.mxu0 %v1911_v2  ;;  %1578 = vmatprep.subr.bf16.mxu1 %v1911_v2  ;;  %v1789_v20 = vld [vmem:[#allocation2 + $0x28] sm:$0xff]   ;;  %v1790_v22 = vld [vmem:[#allocation2 + $0x70] sm:$0xff]   ;;  %v1792_v24 = vld [vmem:[#allocation2 + $0x78] sm:$0xff]  }
  0x19   :  { %1572 = vmatprep.mubr.msk.bf16.mxu0 %vm1912_vm0, %v1911_v2  ;;  %1592 = vmatprep.mubr.msk.bf16.mxu1 %vm1912_vm0, %v1911_v2  ;;  %v1791_v23 = vld [vmem:[#allocation2 + $0x30] sm:$0xff]   ;;  %v1793_v25 = vld [vmem:[#allocation2 + $0x38] sm:$0xff]   ;;  %v1795_v33 = vld [vmem:[#allocation2 + $0xc0] sm:$0xff]  }
  0x1a   :  { %62 = vperm.xlu1 %1766, %v2005_v4   ;;  %91 = vperm.xlu0 %1765, %v2005_v4   ;;  %v1794_v34 = vld [vmem:[#allocation2 + $0x80] sm:$0xff]   ;;  %v1797_v36 = vld [vmem:[#allocation2 + $0xc8] sm:$0xff]   ;;  %v1799_v38 = vld [vmem:[#allocation2 + $0xd0] sm:$0xff]  }
  0x1b   :  { %1559 = vmatpush3.bf16.msra.mxu0 %v1780_v7  ;;  %1579 = vmatpush3.bf16.msra.mxu1 %v1781_v8  ;;  %v1796_v37 = vld [vmem:[#allocation2 + $0x88] sm:$0xff]   ;;  %v1798_v39 = vld [vmem:[#allocation2 + $0x90] sm:$0xff]   ;;  %v1801_v40 = vld [vmem:[#allocation2 + $0xd8] sm:$0xff]  }
  0x1c   :  { %1560 = vmatprep.subr.bf16.mxu0 %v1911_v2  ;;  %1580 = vmatprep.subr.bf16.mxu1 %v1911_v2  ;;  %v1800_v41 = vld [vmem:[#allocation2 + $0x98] sm:$0xff]   ;;  %v1803_v42 = vld [vmem:[#allocation2 + $0xe0] sm:$0xff]   ;;  %v1805_v44 = vld [vmem:[#allocation2 + $0xe8] sm:$0xff]  }
  0x1d   :  { %v1802_v43 = vld [vmem:[#allocation2 + $0xa0] sm:$0xff]   ;;  %v1804_v47 = vld [vmem:[#allocation2 + $0xa8] sm:$0xff]   ;;  %v1806_v48 = vld [vmem:[#allocation2 + $0xf0] sm:$0xff]  }
  0x1e   :  { %1768 = vset.pattern.permute.xlu1 %v1913_v11  ;;  %1767 = vset.pattern.permute.xlu0 %v1913_v11  ;;  %v1807_v49 = vld [vmem:[#allocation2 + $0xb0] sm:$0xff]   ;;  %v1808_v52 = vld [vmem:[#allocation2 + $0xf8] sm:$0xff]   ;;  %v1811_v54 = vld [vmem:[#allocation2 + $0x140] sm:$0xff]  }
  0x1f   :  { %299 = vperm.xlu1 %1768, %v2005_v4   ;;  %296 = vperm.xlu0 %1767, %v2000_v3   ;;  %v1809_v53 = vld [vmem:[#allocation2 + $0xb8] sm:$0xff]   ;;  %v1810_v55 = vld [vmem:[#allocation2 + $0x100] sm:$0xff]   ;;  %v1813_v56 = vld [vmem:[#allocation2 + $0x148] sm:$0xff]  }
  0x20   :  { %1561 = vmatpush3.bf16.msra.mxu0 %v1782_v9  ;;  %1581 = vmatpush3.bf16.msra.mxu1 %v1783_v10  ;;  %v1812_v57 = vld [vmem:[#allocation2 + $0x108] sm:$0xff]   ;;  %v1815_v58 = vld [vmem:[#allocation2 + $0x150] sm:$0xff]   ;;  %v1817_v60 = vld [vmem:[#allocation2 + $0x158] sm:$0xff]  }
  0x21   :  { %1562 = vmatprep.subr.bf16.mxu0 %v1911_v2  ;;  %1582 = vmatprep.subr.bf16.mxu1 %v1911_v2  ;;  %v1814_v59 = vld [vmem:[#allocation2 + $0x110] sm:$0xff]   ;;  %v1816_v61 = vld [vmem:[#allocation2 + $0x118] sm:$0xff]   ;;  %v1819_v62 = vld [vmem:[#allocation2 + $0x160] sm:$0xff]  }
  0x22   :  { %v1818_v0 = vld [vmem:[#allocation2 + $0x120] sm:$0xff]   ;;  %v1821_v1 = vld [vmem:[#allocation2 + $0x168] sm:$0xff]   ;;  %v1823_v5 = vld [vmem:[#allocation2 + $0x170] sm:$0xff]  }
  0x23   :  { %1769 = vset.pattern.permute.xlu1 %v1914_v14  ;;  %1770 = vset.pattern.permute.xlu0 %v1914_v14  ;;  %v1822_v6 = vld [vmem:[#allocation2 + $0x130] sm:$0xff]   ;;  %v1825_v9 = vld [vmem:[#allocation2 + $0x178] sm:$0xff]   ;;  %v1827_v11 = vld [vmem:[#allocation2 + $0x1c0] sm:$0xff]  }
  0x24   :  { %417 = vperm.xlu1 %1769, %v2000_v3   ;;  %420 = vperm.xlu0 %1770, %v2005_v4   ;;  %v1824_v10 = vld [vmem:[#allocation2 + $0x138] sm:$0xff]   ;;  %v1828_v14 = vld [vmem:[#allocation2 + $0x188] sm:$0xff]  }
  0x25   :  { %1563 = vmatpush3.bf16.msra.mxu0 %v1784_v12  ;;  %1583 = vmatpush3.bf16.msra.mxu1 %v1785_v13  ;;  %v1826_v12 = vld [vmem:[#allocation2 + $0x180] sm:$0xff]   ;;  %v1829_v13 = vld [vmem:[#allocation2 + $0x1c8] sm:$0xff]  }
  0x26   :  { %1564 = vmatprep.subr.bf16.mxu0 %v1911_v2  ;;  %1584 = vmatprep.subr.bf16.mxu1 %v1911_v2 }
  0x28   :  { %1771 = vset.pattern.permute.xlu1 %v1915_v17  ;;  %1772 = vset.pattern.permute.xlu0 %v1916_v18  ;;  %v1833_v17 = vld [vmem:[#allocation2 + $0x1d8] sm:$0xff]  }
  0x29   :  { %538 = vperm.xlu1 %1771, %v2000_v3   ;;  %659 = vperm.xlu0 %1772, %v2000_v3  }
  0x2a   :  { %1565 = vmatpush3.bf16.msra.mxu0 %v1786_v15  ;;  %1585 = vmatpush3.bf16.msra.mxu1 %v1787_v16  ;;  %v1831_v15 = vld [vmem:[#allocation2 + $0x1d0] sm:$0xff]  }
  0x2b   :  { %1566 = vmatprep.subr.bf16.mxu0 %v1911_v2  ;;  %1586 = vmatprep.subr.bf16.mxu1 %v1911_v2  ;;  %v1830_v16 = vld [vmem:[#allocation2 + $0x190] sm:$0xff]  }
  0x2d   :  { %541 = vperm.xlu1 %1771, %v2005_v4   ;;  %1775 = vset.pattern.permute.xlu0 %v1917_v21 }
  0x2e   :  { %783 = vperm.xlu0 %1775, %v2005_v4   ;;  %1567 = vmatpush3.bf16.msra.mxu0 %v1788_v19  ;;  %v1835_v19 = vld [vmem:[#allocation2 + $0x1e0] sm:$0xff]  }
  0x2f   :  { %1587 = vmatpush3.bf16.msra.mxu1 %v1789_v20  ;;  %1568 = vmatprep.subr.bf16.mxu0 %v1911_v2 }
  0x30   :  { %1588 = vmatprep.subr.bf16.mxu1 %v1911_v2 }
  0x31   :  { %1773 = vset.pattern.permute.xlu1 %v1916_v18  ;;  %v1832_v18 = vld [vmem:[#allocation2 + $0x198] sm:$0xff]  }
  0x32   :  { %662 = vperm.xlu1 %1773, %v2005_v4   ;;  %1569 = vmatpush3.bf16.msra.mxu0 %v1790_v22  ;;  %v1837_v22 = vld [vmem:[#allocation2 + $0x1e8] sm:$0xff]  }
  0x33   :  { %1589 = vmatpush3.bf16.msra.mxu1 %v1791_v23  ;;  %1570 = vmatprep.subr.bf16.mxu0 %v1911_v2  ;;  %v1836_v23 = vld [vmem:[#allocation2 + $0x1a8] sm:$0xff]  }
  0x34   :  { %1590 = vmatprep.subr.bf16.mxu1 %v1911_v2  ;;  %1777 = vset.pattern.permute.xlu0 %v1918_v26 }
  0x36   :  { %1774 = vset.pattern.permute.xlu1 %v1917_v21  ;;  %1571 = vmatpush3.bf16.msra.mxu0 %v1792_v24  ;;  %v1834_v21 = vld [vmem:[#allocation2 + $0x1a0] sm:$0xff]  }
  0x37   :  { %780 = vperm.xlu1 %1774, %v2000_v3   ;;  %1591 = vmatpush3.bf16.msra.mxu1 %v1793_v25  ;;  %v1839_v25 = vld [vmem:[#allocation2 + $0x1f0] sm:$0xff]  }
  0x38   :  { %1596 = vmatprep.subr.bf16.mxu0 %v1911_v2  ;;  %1616 = vmatprep.subr.bf16.mxu1 %v1911_v2 }
  0x3b   :  { %1776 = vset.pattern.permute.xlu1 %v1918_v26  ;;  %v1838_v26 = vld [vmem:[#allocation2 + $0x1b0] sm:$0xff]  }
  0x3c   :  { %901 = vperm.xlu1 %1776, %v2000_v3   ;;  %v1820_v3 = vld [vmem:[#allocation2 + $0x128] sm:$0xff]  }
  0x40   :  { %904 = vperm.xlu1 %1776, %v2005_v4  }
  0x95   :  { %v60_v28 = vpop.permute.xlu1 %59  ;;  %v89_v29 = vpop.permute.xlu0 %88 }
  0x96   :  { %vm64_vm1 = vcmp.eq.s32.totalorder %v60_v28, %v2044_v30  ;;  %vm93_vm4 = vcmp.eq.s32.totalorder %v89_v29, %v2044_v30  ;;  %v1841_v29 = vld [vmem:[#allocation2 + $0x1f8] sm:$0xff]  }
  0x99   :  { %v63_v31 = vpop.permute.xlu1 %62  ;;  %v92_v32 = vpop.permute.xlu0 %91 }
  0x9a   :  { %vm65_vm2 = vcmp.eq.s32.totalorder %v63_v31, %v2044_v30  ;;  %vm94_vm3 = vcmp.eq.s32.totalorder %v92_v32, %v2044_v30  ;;  %v1840_v32 = vld [vmem:[#allocation2 + $0x1b8] sm:$0xff]  }
  0x9b   :  { %vm1380_vm5 = vmpackc.low %vm65_vm2, %vm64_vm1 }
  0x9c   :  { %vm1370_vm6 = vmpackc.low %vm94_vm3, %vm93_vm4  ;;  %1593 = vmatmul.mubr.msk.bf16.vlgmr.msra.gmra.mrb[0].mxu1 %vm1380_vm5, %v1919_v35 }
  0x9d   :  { %1573 = vmatmul.mubr.msk.bf16.vlgmr.msra.gmra.mrb[0].mxu0 %vm1370_vm6, %v1919_v35  ;;  %1617 = vmatpush3.bf16.msra.mxu1 %v1795_v33 }
  0x9e   :  { %1597 = vmatpush3.bf16.msra.mxu0 %v1794_v34  ;;  %1618 = vmatprep.subr.bf16.mxu1 %v1911_v2  ;;  %v300_v45 = vpop.permute.xlu1 %299  ;;  %v297_v46 = vpop.permute.xlu0 %296 }
  0x9f   :  { %1598 = vmatprep.subr.bf16.mxu0 %v1911_v2  ;;  %1612 = vmatprep.mubr.msk.bf16.mxu0 %vm1912_vm0, %v1911_v2  ;;  %vm302_vm9 = vcmp.eq.s32.totalorder %v300_v45, %v2044_v30  ;;  %vm301_vm10 = vcmp.eq.s32.totalorder %v297_v46, %v2044_v30  ;;  %v1845_v45 = vld [vmem:[%s2230_s5 + $0x18] sm:$0xff]   ;;  %v1846_v46 = vld [vmem:[%s2230_s5 + $0x20] sm:$0xff]  }
  0xa0   :  { %1632 = vmatprep.mubr.msk.bf16.mxu1 %vm1912_vm0, %v1911_v2  ;;  %vm1392_vm12 = vmpackc.low %vm302_vm9, %vm301_vm10 }
  0xa1   :  { %1619 = vmatpush3.bf16.msra.mxu1 %v1797_v36 }
  0xa2   :  { %1599 = vmatpush3.bf16.msra.mxu0 %v1796_v37  ;;  %1620 = vmatprep.subr.bf16.mxu1 %v1911_v2 }
  0xa3   :  { %1600 = vmatprep.subr.bf16.mxu0 %v1911_v2  ;;  %v418_v50 = vpop.permute.xlu1 %417  ;;  %v421_v51 = vpop.permute.xlu0 %420 }
  0xa4   :  { %vm422_vm7 = vcmp.eq.s32.totalorder %v418_v50, %v2044_v30  ;;  %vm423_vm8 = vcmp.eq.s32.totalorder %v421_v51, %v2044_v30 }
  0xa5   :  { %1621 = vmatpush3.bf16.msra.mxu1 %v1799_v38  ;;  %vm1404_vm11 = vmpackc.low %vm423_vm8, %vm422_vm7 }
  0xa6   :  { %1601 = vmatpush3.bf16.msra.mxu0 %v1798_v39  ;;  %1622 = vmatprep.subr.bf16.mxu1 %v1911_v2 }
  0xa7   :  { %1602 = vmatprep.subr.bf16.mxu0 %v1911_v2 }
  0xa8   :  { %v539_v63 = vpop.permute.xlu1 %538  ;;  %v660_v8 = vpop.permute.xlu0 %659 }
  0xa9   :  { %1623 = vmatpush3.bf16.msra.mxu1 %v1801_v40  ;;  %vm664_vm14 = vcmp.eq.s32.totalorder %v660_v8, %v2044_v30  ;;  %vm543_vm15 = vcmp.eq.s32.totalorder %v539_v63, %v2044_v30 }
  0xaa   :  { %1603 = vmatpush3.bf16.msra.mxu0 %v1800_v41  ;;  %1624 = vmatprep.subr.bf16.mxu1 %v1911_v2 }
  0xab   :  { %1604 = vmatprep.subr.bf16.mxu0 %v1911_v2 }
  0xac   :  { %v542_v4 = vpop.permute.xlu1 %541 }
  0xad   :  { %1625 = vmatpush3.bf16.msra.mxu1 %v1803_v42  ;;  %vm544_vm1 = vcmp.eq.s32.totalorder %v542_v4, %v2044_v30  ;;  %v784_v31 = vpop.permute.xlu0 %783 }
  0xae   :  { %1605 = vmatpush3.bf16.msra.mxu0 %v1802_v43  ;;  %1626 = vmatprep.subr.bf16.mxu1 %v1911_v2  ;;  %vm1416_vm3 = vmpackc.low %vm544_vm1, %vm543_vm15  ;;  %vm786_vm7 = vcmp.eq.s32.totalorder %v784_v31, %v2044_v30  ;;  %v1843_v43 = vld [vmem:[%s2230_s5 + $0x8] sm:$0xff]  }
  0xaf   :  { %1606 = vmatprep.subr.bf16.mxu0 %v1911_v2 }
  0xb1   :  { %1627 = vmatpush3.bf16.msra.mxu1 %v1805_v44  ;;  %v663_v7 = vpop.permute.xlu1 %662  ;;  %v1844_v44 = vld [vmem:[%s2230_s5 + $0x10] sm:$0xff]  }
  0xb2   :  { %1607 = vmatpush3.bf16.msra.mxu0 %v1804_v47  ;;  %1628 = vmatprep.subr.bf16.mxu1 %v1911_v2  ;;  %vm665_vm13 = vcmp.eq.s32.totalorder %v663_v7, %v2044_v30 }
  0xb3   :  { %1608 = vmatprep.subr.bf16.mxu0 %v1911_v2  ;;  %vm1428_vm2 = vmpackc.low %vm665_vm13, %vm664_vm14 }
  0xb5   :  { %1629 = vmatpush3.bf16.msra.mxu1 %v1806_v48  ;;  %v1847_v48 = vld [vmem:[%s2230_s5 + $0x28] sm:$0xff]  }
  0xb6   :  { %1609 = vmatpush3.bf16.msra.mxu0 %v1807_v49  ;;  %1630 = vmatprep.subr.bf16.mxu1 %v1911_v2  ;;  %v781_v20 = vpop.permute.xlu1 %780 }
  0xb7   :  { %1610 = vmatprep.subr.bf16.mxu0 %v1911_v2  ;;  %vm785_vm6 = vcmp.eq.s32.totalorder %v781_v20, %v2044_v30 }
  0xb8   :  { %vm1440_vm9 = vmpackc.low %vm786_vm7, %vm785_vm6 }
  0xb9   :  { %1631 = vmatpush3.bf16.msra.mxu1 %v1808_v52 }
  0xba   :  { %1611 = vmatpush3.bf16.msra.mxu0 %v1809_v53  ;;  %1656 = vmatprep.subr.bf16.mxu1 %v1911_v2 }
  0xbb   :  { %1636 = vmatprep.subr.bf16.mxu0 %v1911_v2  ;;  %v902_v24 = vpop.permute.xlu1 %901 }
  0xbc   :  { %1633 = vmatmul.mubr.msk.bf16.vlgmr.msra.gmra.mrb[4].mxu1 %vm1404_vm11, %v1919_v35  ;;  %vm906_vm4 = vcmp.eq.s32.totalorder %v902_v24, %v2044_v30 }
  0xbd   :  { %1613 = vmatmul.mubr.msk.bf16.vlgmr.msra.gmra.mrb[4].mxu0 %vm1392_vm12, %v1919_v35  ;;  %1657 = vmatpush3.bf16.msra.mxu1 %v1811_v54 }
  0xbe   :  { %1637 = vmatpush3.bf16.msra.mxu0 %v1810_v55  ;;  %1658 = vmatprep.subr.bf16.mxu1 %v1911_v2 }
  0xbf   :  { %1638 = vmatprep.subr.bf16.mxu0 %v1911_v2  ;;  %1652 = vmatprep.mubr.msk.bf16.mxu0 %vm1912_vm0, %v1911_v2  ;;  %v905_v28 = vpop.permute.xlu1 %904 }
  0xc0   :  { %1672 = vmatprep.mubr.msk.bf16.mxu1 %vm1912_vm0, %v1911_v2  ;;  %vm907_vm5 = vcmp.eq.s32.totalorder %v905_v28, %v2044_v30 }
  0xc1   :  { %1659 = vmatpush3.bf16.msra.mxu1 %v1813_v56  ;;  %vm1452_vm8 = vmpackc.low %vm907_vm5, %vm906_vm4 }
  0xc2   :  { %1639 = vmatpush3.bf16.msra.mxu0 %v1812_v57  ;;  %1660 = vmatprep.subr.bf16.mxu1 %v1911_v2 }
  0xc3   :  { %1640 = vmatprep.subr.bf16.mxu0 %v1911_v2 }
  0xc5   :  { %1661 = vmatpush3.bf16.msra.mxu1 %v1815_v58 }
  0xc6   :  { %1641 = vmatpush3.bf16.msra.mxu0 %v1814_v59  ;;  %1662 = vmatprep.subr.bf16.mxu1 %v1911_v2  ;;  %v1848_v59 = vld [vmem:[%s2230_s5 + $0x30] sm:$0xff]  }
  0xc7   :  { %1642 = vmatprep.subr.bf16.mxu0 %v1911_v2 }
  0xc9   :  { %1663 = vmatpush3.bf16.msra.mxu1 %v1817_v60 }
  0xca   :  { %1643 = vmatpush3.bf16.msra.mxu0 %v1816_v61  ;;  %1664 = vmatprep.subr.bf16.mxu1 %v1911_v2  ;;  %v1849_v61 = vld [vmem:[%s2230_s5 + $0x38] sm:$0xff]  }
  0xcb   :  { %1644 = vmatprep.subr.bf16.mxu0 %v1911_v2 }
  0xcd   :  { %1665 = vmatpush3.bf16.msra.mxu1 %v1819_v62 }
  0xce   :  { %1645 = vmatpush3.bf16.msra.mxu0 %v1818_v0  ;;  %1666 = vmatprep.subr.bf16.mxu1 %v1911_v2 }
  0xcf   :  { %1646 = vmatprep.subr.bf16.mxu0 %v1911_v2 }
  0xd1   :  { %1667 = vmatpush3.bf16.msra.mxu1 %v1821_v1 }
  0xd2   :  { %1647 = vmatpush3.bf16.msra.mxu0 %v1820_v3  ;;  %1668 = vmatprep.subr.bf16.mxu1 %v1911_v2 }
  0xd3   :  { %1648 = vmatprep.subr.bf16.mxu0 %v1911_v2 }
  0xd5   :  { %1669 = vmatpush3.bf16.msra.mxu1 %v1823_v5 }
  0xd6   :  { %1649 = vmatpush3.bf16.msra.mxu0 %v1822_v6  ;;  %1670 = vmatprep.subr.bf16.mxu1 %v1911_v2 }
  0xd7   :  { %1650 = vmatprep.subr.bf16.mxu0 %v1911_v2 }
  0xd9   :  { %1671 = vmatpush3.bf16.msra.mxu1 %v1825_v9 }
  0xda   :  { %1651 = vmatpush3.bf16.msra.mxu0 %v1824_v10  ;;  %1696 = vmatprep.subr.bf16.mxu1 %v1911_v2 }
  0xdb   :  { %1676 = vmatprep.subr.bf16.mxu0 %v1911_v2 }
  0xdc   :  { %1673 = vmatmul.mubr.msk.bf16.vlgmr.msra.gmra.mrb[8].mxu1 %vm1428_vm2, %v1919_v35 }
  0xdd   :  { %1653 = vmatmul.mubr.msk.bf16.vlgmr.msra.gmra.mrb[8].mxu0 %vm1416_vm3, %v1919_v35  ;;  %1697 = vmatpush3.bf16.msra.mxu1 %v1827_v11 }
  0xde   :  { %1677 = vmatpush3.bf16.msra.mxu0 %v1826_v12  ;;  %1698 = vmatprep.subr.bf16.mxu1 %v1911_v2 }
  0xdf   :  { %1678 = vmatprep.subr.bf16.mxu0 %v1911_v2  ;;  %1692 = vmatprep.mubr.msk.bf16.mxu0 %vm1912_vm0, %v1911_v2 }
  0xe0   :  { %1712 = vmatprep.mubr.msk.bf16.mxu1 %vm1912_vm0, %v1911_v2 }
  0xe1   :  { %1699 = vmatpush3.bf16.msra.mxu1 %v1829_v13 }
  0xe2   :  { %1679 = vmatpush3.bf16.msra.mxu0 %v1828_v14  ;;  %1700 = vmatprep.subr.bf16.mxu1 %v1911_v2 }
  0xe3   :  { %1680 = vmatprep.subr.bf16.mxu0 %v1911_v2 }
  0xe5   :  { %1701 = vmatpush3.bf16.msra.mxu1 %v1831_v15 }
  0xe6   :  { %1681 = vmatpush3.bf16.msra.mxu0 %v1830_v16  ;;  %1702 = vmatprep.subr.bf16.mxu1 %v1911_v2 }
  0xe7   :  { %1682 = vmatprep.subr.bf16.mxu0 %v1911_v2 }
  0xe9   :  { %1703 = vmatpush3.bf16.msra.mxu1 %v1833_v17 }
  0xea   :  { %1683 = vmatpush3.bf16.msra.mxu0 %v1832_v18  ;;  %1704 = vmatprep.subr.bf16.mxu1 %v1911_v2 }
  0xeb   :  { %1684 = vmatprep.subr.bf16.mxu0 %v1911_v2 }
  0xed   :  { %1705 = vmatpush3.bf16.msra.mxu1 %v1835_v19 }
  0xee   :  { %1685 = vmatpush3.bf16.msra.mxu0 %v1834_v21  ;;  %1706 = vmatprep.subr.bf16.mxu1 %v1911_v2 }
  0xef   :  { %1686 = vmatprep.subr.bf16.mxu0 %v1911_v2 }
  0xf1   :  { %1707 = vmatpush3.bf16.msra.mxu1 %v1837_v22 }
  0xf2   :  { %1687 = vmatpush3.bf16.msra.mxu0 %v1836_v23  ;;  %1708 = vmatprep.subr.bf16.mxu1 %v1911_v2  ;;  %v1454_v23 = vld [vmem:[%s2227_s2] ss:$0 sm:$0xff] }
  0xf3   :  { %1688 = vmatprep.subr.bf16.mxu0 %v1911_v2 }
  0xf5   :  { %1709 = vmatpush3.bf16.msra.mxu1 %v1839_v25 }
  0xf6   :  { %1689 = vmatpush3.bf16.msra.mxu0 %v1838_v26  ;;  %1710 = vmatprep.subr.bf16.mxu1 %v1911_v2 }
  0xf7   :  { %1690 = vmatprep.subr.bf16.mxu0 %v1911_v2 }
  0xf9   :  { %1711 = vmatpush3.bf16.msra.mxu1 %v1841_v29 }
  0xfa   :  { %1691 = vmatpush3.bf16.msra.mxu0 %v1840_v32  ;;  %1736 = vmatprep.subr.bf16.mxu1 %v1911_v2 }
  0xfb   :  { %1716 = vmatprep.subr.bf16.mxu0 %v1911_v2 }
  0xfc   :  { %1713 = vmatmul.mubr.msk.bf16.vlgmr.msra.gmra.mrb[12].mxu1 %vm1452_vm8, %v1919_v35 }
  0xfd   :  { %1693 = vmatmul.mubr.msk.bf16.vlgmr.msra.gmra.mrb[12].mxu0 %vm1440_vm9, %v1919_v35  ;;  %1744 = vmatprep.mubr.msk.bf16.mxu1 %vm1912_vm0, %v1911_v2  ;;  %v1842_v35 = vld [vmem:[%s2230_s5] sm:$0xff]  }
  0xfe   :  { %1732 = vmatprep.mubr.msk.bf16.mxu0 %vm1912_vm0, %v1911_v2  ;;  %1717 = vmatpush3.bf16.msra.mxu0 %v1842_v35  ;;  %vm1203_vm0 = vcmask 523264  }
  0xff   :  { %1718 = vmatprep.subr.bf16.mxu0 %v1911_v2 }
 0x102   :  { %1719 = vmatpush3.bf16.msra.mxu0 %v1843_v43 }
 0x103   :  { %1720 = vmatprep.subr.bf16.mxu0 %v1911_v2 }
 0x106   :  { %1721 = vmatpush3.bf16.msra.mxu0 %v1844_v44 }
 0x107   :  { %1722 = vmatprep.subr.bf16.mxu0 %v1911_v2 }
 0x10a   :  { %1723 = vmatpush3.bf16.msra.mxu0 %v1845_v45 }
 0x10b   :  { %1724 = vmatprep.subr.bf16.mxu0 %v1911_v2 }
 0x10e   :  { %1725 = vmatpush3.bf16.msra.mxu0 %v1846_v46 }
 0x10f   :  { %1726 = vmatprep.subr.bf16.mxu0 %v1911_v2 }
 0x112   :  { %1727 = vmatpush3.bf16.msra.mxu0 %v1847_v48 }
 0x113   :  { %1728 = vmatprep.subr.bf16.mxu0 %v1911_v2 }
 0x116   :  { %1729 = vmatpush3.bf16.msra.mxu0 %v1848_v59 }
 0x117   :  { %1730 = vmatprep.subr.bf16.mxu0 %v1911_v2 }
 0x11a   :  { %1731 = vmatpush3.bf16.msra.mxu0 %v1849_v61 }
 0x16f   :  { %v288_v33 = vpop.f32.mrb[0].mxu1 }
 0x170   :  { %v199_v30 = vpop.f32.mrb[0].mxu0  ;;  %v1594_v34 = vpop.f32.mrb[1].mxu1 }
 0x171   :  { %v289_v36 = vadd.f32 %v288_v33, %v199_v30  ;;  %v1574_v37 = vpop.f32.mrb[1].mxu0  ;;  %v291_v38 = vpop.f32.mrb[2].mxu1 }
 0x172   :  { %v202_v39 = vpop.f32.mrb[2].mxu0  ;;  %v1595_v40 = vpop.f32.mrb[3].mxu1 }
 0x173   :  { %v292_v41 = vadd.f32 %v291_v38, %v202_v39  ;;  %v1575_v42 = vpop.f32.mrb[3].mxu0 }
 0x18f   :  { %v528_v47 = vpop.f32.mrb[4].mxu1 }
 0x190   :  { %v407_v49 = vpop.f32.mrb[4].mxu0  ;;  %v1634_v50 = vpop.f32.mrb[5].mxu1 }
 0x191   :  { %v414_v51 = vadd.f32 %v407_v49, %v289_v36  ;;  %v1614_v52 = vpop.f32.mrb[5].mxu0  ;;  %v531_v53 = vpop.f32.mrb[6].mxu1  ;;  %v1072_v50 = vshrl.u32 %v54_v27, 7 }
 0x192   :  { %v410_v54 = vpop.f32.mrb[6].mxu0  ;;  %v1635_v55 = vpop.f32.mrb[7].mxu1 }
 0x193   :  { %v535_v56 = vadd.f32 %v528_v47, %v414_v51  ;;  %v415_v57 = vadd.f32 %v410_v54, %v292_v41  ;;  %v1615_v58 = vpop.f32.mrb[7].mxu0  ;;  %v1063_v51 = vld [vmem:[%s2228_s3] sm:$0x1]  ;;  %v2172_v52 = vsub.s32 0, %v1072_v50 }
 0x194   :  { %v1067_v55 = vld [vmem:[%s2229_s4] sm:$0x1] }
 0x195   :  { %v536_v60 = vadd.f32 %v531_v53, %v415_v57 }
 0x1af   :  { %v770_v62 = vpop.f32.mrb[8].mxu1 }
 0x1b0   :  { %v649_v63 = vpop.f32.mrb[8].mxu0  ;;  %v1674_v0 = vpop.f32.mrb[9].mxu1 }
 0x1b1   :  { %v656_v1 = vadd.f32 %v649_v63, %v535_v56  ;;  %v1654_v3 = vpop.f32.mrb[9].mxu0  ;;  %v773_v4 = vpop.f32.mrb[10].mxu1 }
 0x1b2   :  { %v652_v5 = vpop.f32.mrb[10].mxu0  ;;  %v1675_v6 = vpop.f32.mrb[11].mxu1  ;;  %v1850_v3 = vld [vmem:[%s2234_s9] sm:$0xff]  }
 0x1b3   :  { %v777_v7 = vadd.f32 %v770_v62, %v656_v1  ;;  %v657_v8 = vadd.f32 %v652_v5, %v536_v60  ;;  %v1655_v9 = vpop.f32.mrb[11].mxu0  ;;  %1737 = vmatpush3.bf16.msra.mxu1 %v1850_v3  ;;  %v1852_v5 = vld [vmem:[%s2234_s9 + $0x10] sm:$0xff]   ;;  %v1853_v6 = vld [vmem:[%s2234_s9 + $0x18] sm:$0xff]  }
 0x1b4   :  { %1738 = vmatprep.subr.bf16.mxu1 %v1911_v2 }
 0x1b5   :  { %v778_v10 = vadd.f32 %v773_v4, %v657_v8  ;;  %v1851_v4 = vld [vmem:[%s2234_s9 + $0x8] sm:$0xff]  }
 0x1b7   :  { %1739 = vmatpush3.bf16.msra.mxu1 %v1851_v4 }
 0x1b8   :  { %1740 = vmatprep.subr.bf16.mxu1 %v1911_v2 }
 0x1bb   :  { %1741 = vmatpush3.bf16.msra.mxu1 %v1852_v5 }
 0x1bc   :  { %1742 = vmatprep.subr.bf16.mxu1 %v1911_v2 }
 0x1bf   :  { %1743 = vmatpush3.bf16.msra.mxu1 %v1853_v6 }
 0x1cf   :  { %v1012_v11 = vpop.f32.mrb[12].mxu1 }
 0x1d0   :  { %v891_v12 = vpop.f32.mrb[12].mxu0  ;;  %v1714_v13 = vpop.f32.mrb[13].mxu1 }
 0x1d1   :  { %v898_v14 = vadd.f32 %v891_v12, %v777_v7  ;;  %v1694_v15 = vpop.f32.mrb[13].mxu0  ;;  %v1015_v16 = vpop.f32.mrb[14].mxu1  ;;  %v1455_v7 = vld [vmem:[%s2231_s6] ss:$0 sm:$0xff] }
 0x1d2   :  { %v894_v17 = vpop.f32.mrb[14].mxu0  ;;  %v1715_v18 = vpop.f32.mrb[15].mxu1 }
 0x1d3   :  { %v1019_v19 = vadd.f32 %v1012_v11, %v898_v14  ;;  %v899_v20 = vadd.f32 %v894_v17, %v778_v10  ;;  %v1695_v21 = vpop.f32.mrb[15].mxu0 }
 0x1d5   :  { %v1020_v22 = vadd.f32 %v1015_v16, %v899_v20  ;;  %v1028_v25 = vadd.f32 %v1454_v23, %v1019_v19 }
 0x1d7   :  { %v1029_v24 = vadd.f32 %v1454_v23, %v1020_v22 }
 0x1d9   :  { %v1040_v26 = vmul.f32 0.0, %v1029_v24 }
 0x1db   :  { %v1041_v28 = vadd.f32 %v1040_v26, %v1028_v25 }
 0x1dd   :  { %v1042_v29 = vrot.slane %v1041_v28, 4 }
 0x1df   :  { %v1043_v31 = vadd.f32 %v1042_v29, %v1041_v28 }
 0x1e1   :  { %v1044_v32 = vrot.slane %v1043_v31, 2 }
 0x1e3   :  { %v1045_v33 = vadd.f32 %v1044_v32, %v1043_v31 }
 0x1e5   :  { %v1046_v30 = vrot.slane %v1045_v33, 1 }
 0x1e7   :  { %v1047_v34 = vadd.f32 %v1046_v30, %v1045_v33 }
 0x1e9   :  { %v1048_v36 = vmul.f32 0.125, %v1047_v34 }
 0x1eb   :  { %v1049_v37 = vsub.f32 %v1028_v25, %v1048_v36  ;;  %v1050_v38 = vsub.f32 %v1029_v24, %v1048_v36 }
 0x1ed   :  { %v1052_v39 = vmul.f32 0.0, %v1050_v38  ;;  %v1053_v40 = vmul.f32 %v1049_v37, %v1049_v37 }
 0x1ef   :  { %v1054_v41 = vmul.f32 %v1052_v39, %v1052_v39 }
 0x1f1   :  { %v1055_v42 = vadd.f32 %v1054_v41, %v1053_v40 }
 0x1f3   :  { %v1056_v35 = vrot.slane %v1055_v42, 4 }
 0x1f5   :  { %v1057_v43 = vadd.f32 %v1056_v35, %v1055_v42  ;;  %v1230_v42 = vld [vmem:[%s2232_s7] sm:$0x1] }
 0x1f7   :  { %v1058_v44 = vrot.slane %v1057_v43, 2 }
 0x1f9   :  { %v1059_v45 = vadd.f32 %v1058_v44, %v1057_v43  ;;  %v1234_v44 = vld [vmem:[%s2233_s8] sm:$0x1]  ;;  %s1920_s8 = smov [#allocation5]  }
 0x1fa   :  { %s1346_s24 = sshll.u32 %s1920_s8, 4  ;;  %s1347_s24 = int_to_ptr.vmem [resolvable:$true] %s1346_s24 }
 0x1fb   :  { %v1060_v46 = vrot.slane %v1059_v45, 1  ;;  %s1880_s25 = scalar_lea.vmem %s1347_s24, 256  ;;  %p1885_p9 = scmp.lt.s32.totalorder %s1347_s24, %s1347_s24 }
 0x1fc   :  { %p1881_p8 = scmp.ne.s32.totalorder %s1347_s24, %s1880_s25  ;;  %p1886_p10 = scmp.lt.s32.totalorder %s1880_s25, %s1880_s25 }
 0x1fd   :  { %v1061_v47 = vadd.f32 %v1060_v46, %v1059_v45 }
 0x1fe   :  { %p1887_p11 = por %p1886_p10, %p1885_p9 }
 0x1ff   :  { %v1062_v48 = vmul.f32 0.125, %v1061_v47 }
 0x200   :  { %p1888_p12 = pnand %p1887_p11, %p1881_p8 }
 0x201   :  { %v1064_v49 = vadd.f32 1e-05, %v1062_v48 }
 0x203   :  { %1854 = vrsqrt.f32 %v1064_v49 }
 0x20d   :  { %v1855_v53 = vpop.eup %1854 }
 0x20e   :  { %v1066_v54 = vmul.f32 %v1855_v53, %v1063_v51 }
 0x210   :  { %v1068_v56 = vmul.f32 %v1066_v54, %v1048_v36  ;;  %v1074_v57 = vrot.slane %v1066_v54, %v2172_v52 }
 0x212   :  { %v1069_v58 = vsub.f32 %v1067_v55, %v1068_v56  ;;  %v1076_v59 = vmul.f32 %v1074_v57, %v1028_v25  ;;  %v1077_v60 = vmul.f32 %v1074_v57, %v1029_v24  ;;  %v1464_v57 = vld [vmem:[%s2235_s10] ss:$0 sm:$0xff] }
 0x214   :  { %v1082_v27 = vrot.slane %v1069_v58, %v2172_v52 }
 0x216   :  { %v1085_v61 = vadd.f32 %v1082_v27, %v1077_v60  ;;  %v1084_v62 = vadd.f32 %v1082_v27, %v1076_v59 }
 0x218   :  { %v1086_v63 = vmax.f32 %v1084_v62, 0.0  ;;  %v1087_v0 = vmax.f32 %v1085_v61, 0.0 }
 0x21a   :  { %v1088_v1 = vpack.c.bf16 %v1087_v0, %v1086_v63 }
 0x21c   :  { %1733 = vmatmul.mubr.bf16.vlgmr.msra.gmra.mrb[16].mxu0 %v1088_v1 }
 0x2ef   :  { %v1194_v8 = vpop.f32.mrb[16].mxu0 }
 0x2f0   :  { %v1734_v9 = vpop.f32.mrb[17].mxu0  ;;  %v1195_v11 = vadd.f32 %v1455_v7, %v1194_v8 }
 0x2f1   :  { %v1197_v10 = vpop.f32.mrb[18].mxu0 }
 0x2f2   :  { %v1198_v12 = vadd.f32 %v1455_v7, %v1197_v10  ;;  %v1735_v13 = vpop.f32.mrb[19].mxu0  ;;  %v1204_v15 = vsel %vm1203_vm0, %v1195_v11, 0.0 }
 0x2f4   :  { %v1202_v14 = vmul.f32 0.0, %v1198_v12 }
 0x2f6   :  { %v1205_v2 = vsel %vm1203_vm0, %v1202_v14, 0.0 }
 0x2f7   :  { %v1206_v16 = vadd.f32 %v1205_v2, %v1204_v15 }
 0x2f9   :  { %v1207_v17 = vrot.slane %v1206_v16, 4 }
 0x2fb   :  { %v1208_v18 = vadd.f32 %v1207_v17, %v1206_v16 }
 0x2fd   :  { %v1209_v19 = vrot.slane %v1208_v18, 2 }
 0x2ff   :  { %v1210_v20 = vadd.f32 %v1209_v19, %v1208_v18 }
 0x301   :  { %v1211_v21 = vrot.slane %v1210_v20, 1 }
 0x303   :  { %v1212_v22 = vadd.f32 %v1211_v21, %v1210_v20 }
 0x305   :  { %v1213_v23 = vmul.f32 0.125, %v1212_v22 }
 0x307   :  { %v1214_v24 = vsub.f32 %v1195_v11, %v1213_v23  ;;  %v1215_v25 = vsub.f32 %v1198_v12, %v1213_v23 }
 0x309   :  { %v1217_v26 = vmul.f32 0.0, %v1215_v25  ;;  %v1218_v28 = vmul.f32 %v1214_v24, %v1214_v24 }
 0x30b   :  { %v1219_v29 = vmul.f32 %v1217_v26, %v1217_v26  ;;  %v1220_v31 = vsel %vm1203_vm0, %v1218_v28, 0.0 }
 0x30d   :  { %v1221_v32 = vsel %vm1203_vm0, %v1219_v29, 0.0 }
 0x30e   :  { %v1222_v33 = vadd.f32 %v1221_v32, %v1220_v31 }
 0x310   :  { %v1223_v30 = vrot.slane %v1222_v33, 4 }
 0x312   :  { %v1224_v34 = vadd.f32 %v1223_v30, %v1222_v33 }
 0x314   :  { %v1225_v36 = vrot.slane %v1224_v34, 2 }
 0x316   :  { %v1226_v37 = vadd.f32 %v1225_v36, %v1224_v34 }
 0x318   :  { %v1227_v38 = vrot.slane %v1226_v37, 1 }
 0x31a   :  { %v1228_v39 = vadd.f32 %v1227_v38, %v1226_v37 }
 0x31c   :  { %v1229_v40 = vmul.f32 0.125, %v1228_v39 }
 0x31e   :  { %v1231_v41 = vadd.f32 1e-05, %v1229_v40 }
 0x320   :  { %1856 = vrsqrt.f32 %v1231_v41 }
 0x32a   :  { %v1857_v35 = vpop.eup %1856 }
 0x32b   :  { %v1233_v43 = vmul.f32 %v1857_v35, %v1230_v42 }
 0x32d   :  { %v1235_v45 = vmul.f32 %v1233_v43, %v1213_v23  ;;  %v1241_v46 = vrot.slane %v1233_v43, %v2172_v52 }
 0x32f   :  { %v1236_v47 = vsub.f32 %v1234_v44, %v1235_v45  ;;  %v1243_v48 = vmul.f32 %v1241_v46, %v1195_v11  ;;  %v1244_v49 = vmul.f32 %v1241_v46, %v1198_v12 }
 0x331   :  { %v1249_v50 = vrot.slane %v1236_v47, %v2172_v52 }
 0x333   :  { %v1251_v51 = vadd.f32 %v1249_v50, %v1243_v48  ;;  %v1252_v53 = vadd.f32 %v1249_v50, %v1244_v49 }
 0x335   :  { %v1253_v54 = vmax.f32 %v1251_v51, 0.0  ;;  %v1254_v55 = vmax.f32 %v1252_v53, 0.0 }
 0x337   :  { %v1255_v56 = vpack.c.bf16 %v1254_v55, %v1253_v54 }
 0x339   :  { %1745 = vmatmul.mubr.msk.bf16.vlgmr.msra.gmra.mrb[16].mxu1 %vm1203_vm0, %v1255_v56 }
 0x40c   :  { %v1332_v58 = vpop.f32.mrb[16].mxu1 }
 0x40d   :  { %v1333_v59 = vadd.f32 %v1464_v57, %v1332_v58  ;;  %v1746_v60 = vpop.f32.mrb[17].mxu1 }
 0x40e   :  { %v1335_v27 = vpop.f32.mrb[18].mxu1 }
 0x40f   :  { %1339 = vst [vmem:[#allocation5] sm:$0xff] %v1333_v59  ;;  %v1336_v52 = vadd.f32 %v1464_v57, %v1335_v27  ;;  %v1747_v61 = vpop.f32.mrb[19].mxu1 }
 0x411   :  { %1340 = vst [vmem:[#allocation5 + $0x8] sm:$0xff] %v1336_v52 }
 0x412   :  { %1891 = shalt.err (!%p1888_p12)
}
 0x413   :  { %s1892_s27 = scalar_lea.hbm %s2236_s11, 256 }
 0x414   :  { %p1893_p13 = scmp.ne.s32.totalorder %s2236_s11, %s1892_s27  ;;  %p1896_p0 = scmp.lt.u32.totalorder %s1892_s27, %s2236_s11 }
 0x416   :  { %p1898_p1 = pnand %p1896_p0, %p1893_p13 }
 0x418   :  { %1901 = shalt.err (!%p1898_p1)
}
 0x419   :  { %s1921_s2 = smov 128   ;;  %s1922_s12 = smov 8  }
 0x41a   :  { %1352 = dma.vmem_to_hbm [thread:$0]  %s1347_s24, 256, %s2236_s11, [#allocation4], %s1921_s2, %s1921_s2, %s1922_s12  }
 0x41b   :  { %1904 = dma.done.wait [#allocation4], 256  }
 0x41c   :  { %1905 = vsyncadd [#allocation4], 4294967040 }
 0x41d   :  { %1356 = vsyncpa [#allocation3], 1 }
 0x41e   :  { %1357 = vsyncpa [#allocation4], 1 }

</bundles_post_ra>
